<compile_context>
chip_gen: v7x
topology: tpu7x:2x2x1
jax: 0.10.0
libtpu: 0.0.40
codegen_flags: <defaults>
</compile_context>

<pallas_src>
import functools

import jax
import jax.numpy as jnp
from jax.experimental import pallas as pl
from jax.experimental.pallas import tpu as pltpu


def _round_up(x, m):
    return ((x + m - 1) // m) * m


def _vmem_capacity_bytes():
    try:
        return int(pltpu.get_tpu_info().vmem_capacity_bytes)
    except Exception:
        return 64 << 20   # conservative fallback (v7x per-TC VMEM)


def _pick_hidden_chunk(hidden, max_chunk):
    """Largest multiple of 128 <= max_chunk that divides hidden (else hidden)."""
    if hidden <= max_chunk:
        return hidden
    start = (max_chunk // 128) * 128
    for hc in range(start, 127, -128):
        if hidden % hc == 0:
            return hc
    return hidden


def feed_forward_kernel(x_ref, w1_ref, b1_ref, w2_ref, b2_ref, o_ref, acc_ref,
                        *, hc, num_chunks, compute_dtype):
    # x block: (TM, dim); W1/W2/b1/b2 are VMEM-resident (constant index_map),
    # already stored in compute_dtype (no per-step weight casts).
    x = x_ref[...]
    if x.dtype != compute_dtype:
        x = x.astype(compute_dtype)

    # Hidden dim in static (dim, Hc) / (Hc, dim) chunks: caps the live (TM, Hc)
    # intermediate; static slice starts -> zero-cost views of resident weights.
    for c in range(num_chunks):
        s = c * hc
        # Linear 1 chunk (MXU, f32 accumulation) + bias + Swish in f32.
        h = jnp.dot(x, w1_ref[:, s:s + hc], preferred_element_type=jnp.float32)
        h = h + b1_ref[:, s:s + hc]
        h = h * jax.nn.sigmoid(h)            # Swish (VPU + EUP, f32)
        # TODO(synk): training-mode nn.Dropout not implemented (p=0.0 / eval path).
        # Linear 2 chunk (MXU, f32 accumulation) into the f32 scratch accumulator.
        part = jnp.dot(h.astype(compute_dtype), w2_ref[s:s + hc, :],
                       preferred_element_type=jnp.float32)
        if c == 0:
            acc_ref[...] = part
        else:
            acc_ref[...] += part

    o_ref[...] = (acc_ref[...] + b2_ref[...]).astype(o_ref.dtype)


def feed_forward(x, params, *, compute_dtype=jnp.bfloat16, max_tile_rows=512,
                 max_hidden_chunk=512):
    """x: (B, N, dim). Returns (B, N, dim).

    Default compute_dtype=bf16 is the production MXU path (f32 accumulation);
    pass jnp.float32 for bit-tight validation against an f32 reference.
    """
    B, N, dim = x.shape
    hidden = params["w1"].shape[1]

    # Pre-cast MXU operands once in the wrapper; biases stay f32 so bias-add /
    # Swish run in f32 (mandatory on v5e, cheap everywhere).
    w1 = params["w1"].astype(compute_dtype)
    w2 = params["w2"].astype(compute_dtype)
    b1 = params["b1"].astype(jnp.float32)
    b2 = params["b2"].astype(jnp.float32)

    # Flatten batch x sequence so the matmul M dimension is large.
    m_rows = B * N
    xm = x.reshape(m_rows, dim)

    hc = _pick_hidden_chunk(hidden, max_hidden_chunk)
    num_chunks = hidden // hc

    # --- VMEM accounting (weights + streamed blocks + intermediates) ---------
    cap = _vmem_capacity_bytes()
    budget = int(0.70 * cap)              # ~45 MiB on v7x, ~90 MiB on v5e/v6e
    wsz = jnp.dtype(compute_dtype).itemsize
    xsz = xm.dtype.itemsize
    w_bytes = (dim * hidden + hidden * dim) * wsz + (hidden + dim) * 4

    def footprint(t):
        return int(2 * w_bytes            # resident weights (assume 2 buffers)
                   + 2 * t * dim * xsz    # x block, double-buffered
                   + 2 * t * dim * xsz    # out block, double-buffered
                   + t * dim * 4          # f32 accumulator scratch
                   + 2 * t * hc * 4)      # (TM, Hc) intermediate + cast copy

    # Row tile: multiple of 8, as large as the budget allows, but keep >= 2
    # grid steps so the pipeline overlaps DMA and both v7x cores get work.
    tm = min(max_tile_rows, _round_up(m_rows, 8))
    tm = max(8, (tm // 8) * 8)
    if m_rows <= tm and m_rows > 8:
        tm = max(8, _round_up((m_rows + 1) // 2, 8))
    while tm > 8 and footprint(tm) > budget:
        tm -= 8

    vmem_limit = int(min(0.9 * cap, max(1.5 * footprint(tm), 32 << 20)))

    kern = functools.partial(feed_forward_kernel, hc=hc, num_chunks=num_chunks,
                             compute_dtype=compute_dtype)

    def resident(shape):
        # Constant block index -> loaded once, stays in VMEM across row tiles.
        return pl.BlockSpec(shape, lambda i: (0,) * len(shape))

    out = pl.pallas_call(
        kern,
        out_shape=jax.ShapeDtypeStruct((m_rows, dim), x.dtype),
        grid=(pl.cdiv(m_rows, tm),),          # ragged last block masked by Pallas
        in_specs=[
            pl.BlockSpec((tm, dim), lambda i: (i, 0)),   # x rows (streamed)
            resident((dim, hidden)),                     # W1^T (compute_dtype)
            resident((1, hidden)),                       # b1 (f32)
            resident((hidden, dim)),                     # W2^T (compute_dtype)
            resident((1, dim)),                          # b2 (f32)
        ],
        out_specs=pl.BlockSpec((tm, dim), lambda i: (i, 0)),
        scratch_shapes=[pltpu.VMEM((tm, dim), jnp.float32)],
        compiler_params=pltpu.CompilerParams(
            dimension_semantics=("parallel",),
            vmem_limit_bytes=vmem_limit),
    )(xm, w1, b1, w2, b2)

    return out.reshape(B, N, dim)


def reference(x, p):
    """Pure-JAX f32 reference mirroring the PyTorch forward (dropout=0)."""
    h = x @ p["w1"] + p["b1"]
    h = h * jax.nn.sigmoid(h)          # Swish
    return h @ p["w2"] + p["b2"]


def init_params(key, dim, mult):
    hidden = dim * mult
    ks = jax.random.split(key, 4)
    s = 0.05
    return {
        # Stored transposed relative to nn.Linear so the kernel does row @ W.
        "w1": s * jax.random.normal(ks[0], (dim, hidden), jnp.float32),
        "b1": s * jax.random.normal(ks[1], (1, hidden), jnp.float32),
        "w2": s * jax.random.normal(ks[2], (hidden, dim), jnp.float32),
        "b2": s * jax.random.normal(ks[3], (1, dim), jnp.float32),
    }


if __name__ == "__main__":
    # dim=128 keeps the output lane-dense (unmasked stores); N=9 gives
    # m_rows=18 so the ragged last row tile is exercised.
    B, N, dim, mult = 2, 9, 128, 4          # hidden = 512

    key = jax.random.PRNGKey(0)
    kx, kp = jax.random.split(key)
    x = jax.random.normal(kx, (B, N, dim), jnp.float32)
    params = init_params(kp, dim, mult)

    ref = reference(x, params)

    # f32 MXU path: tight check; max_hidden_chunk=256 exercises the 2-chunk
    # hidden accumulation loop.
    out_f32 = feed_forward(x, params, compute_dtype=jnp.float32,
                           max_hidden_chunk=256)
    out_f32 = jax.block_until_ready(out_f32)
    assert out_f32.shape == (B, N, dim)
    assert jnp.allclose(out_f32, ref, atol=1e-4, rtol=1e-4), "f32 mismatch"

    # bf16 production path (f32 accumulation): looser tolerance.
    out_bf16 = feed_forward(x, params)
    out_bf16 = jax.block_until_ready(out_bf16)
    assert jnp.allclose(out_bf16, ref, atol=5e-2, rtol=5e-2), "bf16 mismatch"

    print("KERNEL_OK")
</pallas_src>

<mosaic_0001>
module attributes {stable_mosaic.version = 11 : i64} {
  func.func @feed_forward_kernel(%arg0: i32, %arg1: memref<16x128xf32, #tpu.memory_space<vmem>>, %arg2: memref<128x512xf32, #tpu.memory_space<vmem>>, %arg3: memref<1x512xf32, #tpu.memory_space<vmem>>, %arg4: memref<512x128xf32, #tpu.memory_space<vmem>>, %arg5: memref<1x128xf32, #tpu.memory_space<vmem>>, %arg6: memref<16x128xf32, #tpu.memory_space<vmem>>, %arg7: memref<16x128xf32, #tpu.memory_space<vmem>>) attributes {dimension_semantics = [#tpu.dimension_semantics<parallel>], iteration_bounds = array<i64: 2>, scalar_prefetch = 0 : i64, scratch_operands = 1 : i64, tpu.core_type = #tpu.core_type<tc>, window_params = [{transform_indices = @transform_0, window_bounds = array<i64: 16, 128>}, {pipeline_mode = #tpu.pipeline_mode<synchronous>, transform_indices = @transform_1, window_bounds = array<i64: 128, 512>}, {pipeline_mode = #tpu.pipeline_mode<synchronous>, transform_indices = @transform_2, window_bounds = array<i64: 1, 512>}, {pipeline_mode = #tpu.pipeline_mode<synchronous>, transform_indices = @transform_3, window_bounds = array<i64: 512, 128>}, {pipeline_mode = #tpu.pipeline_mode<synchronous>, transform_indices = @transform_4, window_bounds = array<i64: 1, 128>}, {transform_indices = @transform_5, window_bounds = array<i64: 16, 128>}]} {
    %c0 = arith.constant 0 : index
    %c0_0 = arith.constant 0 : index
    %0 = vector.load %arg1[%c0, %c0_0] : memref<16x128xf32, #tpu.memory_space<vmem>>, vector<16x128xf32>
    %c0_1 = arith.constant 0 : index
    %c0_2 = arith.constant 0 : index
    %1 = vector.load %arg2[%c0_1, %c0_2] : memref<128x512xf32, #tpu.memory_space<vmem>>, vector<128x256xf32>
    %cst = arith.constant dense<0.000000e+00> : vector<16x256xf32>
    %2 = tpu.matmul %0, %1, %cst {dimension_numbers = #tpu.dot_dimension_numbers<[1], [0], [0], [1], [0, 0, 1, 1], [], []>} : vector<16x128xf32>, vector<128x256xf32>, vector<16x256xf32> -> vector<16x256xf32>
    %c0_3 = arith.constant 0 : index
    %c0_4 = arith.constant 0 : index
    %3 = vector.load %arg3[%c0_3, %c0_4] : memref<1x512xf32, #tpu.memory_space<vmem>>, vector<1x256xf32>
    %4 = vector.broadcast %3 : vector<1x256xf32> to vector<16x256xf32>
    %5 = arith.addf %2, %4 : vector<16x256xf32>
    %6 = arith.negf %5 : vector<16x256xf32>
    %7 = math.exp %6 : vector<16x256xf32>
    %cst_5 = arith.constant 1.000000e+00 : f32
    %8 = vector.broadcast %cst_5 : f32 to vector<16x256xf32>
    %9 = arith.addf %8, %7 : vector<16x256xf32>
    %10 = arith.divf %8, %9 : vector<16x256xf32>
    %11 = arith.mulf %5, %10 : vector<16x256xf32>
    %c0_6 = arith.constant 0 : index
    %c0_7 = arith.constant 0 : index
    %12 = vector.load %arg4[%c0_6, %c0_7] : memref<512x128xf32, #tpu.memory_space<vmem>>, vector<256x128xf32>
    %cst_8 = arith.constant dense<0.000000e+00> : vector<16x128xf32>
    %13 = tpu.matmul %11, %12, %cst_8 {dimension_numbers = #tpu.dot_dimension_numbers<[1], [0], [0], [1], [0, 0, 1, 1], [], []>} : vector<16x256xf32>, vector<256x128xf32>, vector<16x128xf32> -> vector<16x128xf32>
    %c0_9 = arith.constant 0 : index
    %c0_10 = arith.constant 0 : index
    %14 = vector.load %arg7[%c0_9, %c0_10] : memref<16x128xf32, #tpu.memory_space<vmem>>, vector<16x128xf32>
    tpu.vector_store %arg7[%c0_9, %c0_10], %13 {strides = array<i32>} : memref<16x128xf32, #tpu.memory_space<vmem>>, vector<16x128xf32>,
    %c0_11 = arith.constant 0 : index
    %c256 = arith.constant 256 : index
    %15 = vector.load %arg2[%c0_11, %c256] : memref<128x512xf32, #tpu.memory_space<vmem>>, vector<128x256xf32>
    %cst_12 = arith.constant dense<0.000000e+00> : vector<16x256xf32>
    %16 = tpu.matmul %0, %15, %cst_12 {dimension_numbers = #tpu.dot_dimension_numbers<[1], [0], [0], [1], [0, 0, 1, 1], [], []>} : vector<16x128xf32>, vector<128x256xf32>, vector<16x256xf32> -> vector<16x256xf32>
    %c0_13 = arith.constant 0 : index
    %c256_14 = arith.constant 256 : index
    %17 = vector.load %arg3[%c0_13, %c256_14] : memref<1x512xf32, #tpu.memory_space<vmem>>, vector<1x256xf32>
    %18 = vector.broadcast %17 : vector<1x256xf32> to vector<16x256xf32>
    %19 = arith.addf %16, %18 : vector<16x256xf32>
    %20 = arith.negf %19 : vector<16x256xf32>
    %21 = math.exp %20 : vector<16x256xf32>
    %cst_15 = arith.constant 1.000000e+00 : f32
    %22 = vector.broadcast %cst_15 : f32 to vector<16x256xf32>
    %23 = arith.addf %22, %21 : vector<16x256xf32>
    %24 = arith.divf %22, %23 : vector<16x256xf32>
    %25 = arith.mulf %19, %24 : vector<16x256xf32>
    %c256_16 = arith.constant 256 : index
    %c0_17 = arith.constant 0 : index
    %26 = vector.load %arg4[%c256_16, %c0_17] : memref<512x128xf32, #tpu.memory_space<vmem>>, vector<256x128xf32>
    %cst_18 = arith.constant dense<0.000000e+00> : vector<16x128xf32>
    %27 = tpu.matmul %25, %26, %cst_18 {dimension_numbers = #tpu.dot_dimension_numbers<[1], [0], [0], [1], [0, 0, 1, 1], [], []>} : vector<16x256xf32>, vector<256x128xf32>, vector<16x128xf32> -> vector<16x128xf32>
    %c0_19 = arith.constant 0 : index
    %c0_20 = arith.constant 0 : index
    %28 = vector.load %arg7[%c0_19, %c0_20] : memref<16x128xf32, #tpu.memory_space<vmem>>, vector<16x128xf32>
    %29 = arith.addf %28, %27 : vector<16x128xf32>
    %c0_21 = arith.constant 0 : index
    %c0_22 = arith.constant 0 : index
    %30 = vector.load %arg7[%c0_21, %c0_22] : memref<16x128xf32, #tpu.memory_space<vmem>>, vector<16x128xf32>
    tpu.vector_store %arg7[%c0_21, %c0_22], %29 {strides = array<i32>} : memref<16x128xf32, #tpu.memory_space<vmem>>, vector<16x128xf32>,
    %c0_23 = arith.constant 0 : index
    %c0_24 = arith.constant 0 : index
    %31 = vector.load %arg7[%c0_23, %c0_24] : memref<16x128xf32, #tpu.memory_space<vmem>>, vector<16x128xf32>
    %c0_25 = arith.constant 0 : index
    %c0_26 = arith.constant 0 : index
    %32 = vector.load %arg5[%c0_25, %c0_26] : memref<1x128xf32, #tpu.memory_space<vmem>>, vector<1x128xf32>
    %33 = vector.broadcast %32 : vector<1x128xf32> to vector<16x128xf32>
    %34 = arith.addf %31, %33 : vector<16x128xf32>
    %c0_27 = arith.constant 0 : index
    %c0_28 = arith.constant 0 : index
    %35 = vector.load %arg6[%c0_27, %c0_28] : memref<16x128xf32, #tpu.memory_space<vmem>>, vector<16x128xf32>
    tpu.vector_store %arg6[%c0_27, %c0_28], %34 {strides = array<i32>} : memref<16x128xf32, #tpu.memory_space<vmem>>, vector<16x128xf32>,
    return
  }
  func.func @transform_0(%arg0: i32) -> (i32, i32) {
    %c0_i32 = arith.constant 0 : i32
    %c0_i32_0 = arith.constant 0 : i32
    return %arg0, %c0_i32 : i32, i32
  }
  func.func @transform_1(%arg0: i32) -> (i32, i32) {
    %c0_i32 = arith.constant 0 : i32
    %c0_i32_0 = arith.constant 0 : i32
    %c0_i32_1 = arith.constant 0 : i32
    return %c0_i32, %c0_i32_0 : i32, i32
  }
  func.func @transform_2(%arg0: i32) -> (i32, i32) {
    %c0_i32 = arith.constant 0 : i32
    %c0_i32_0 = arith.constant 0 : i32
    %c0_i32_1 = arith.constant 0 : i32
    return %c0_i32, %c0_i32_0 : i32, i32
  }
  func.func @transform_3(%arg0: i32) -> (i32, i32) {
    %c0_i32 = arith.constant 0 : i32
    %c0_i32_0 = arith.constant 0 : i32
    %c0_i32_1 = arith.constant 0 : i32
    return %c0_i32, %c0_i32_0 : i32, i32
  }
  func.func @transform_4(%arg0: i32) -> (i32, i32) {
    %c0_i32 = arith.constant 0 : i32
    %c0_i32_0 = arith.constant 0 : i32
    %c0_i32_1 = arith.constant 0 : i32
    return %c0_i32, %c0_i32_0 : i32, i32
  }
  func.func @transform_5(%arg0: i32) -> (i32, i32) {
    %c0_i32 = arith.constant 0 : i32
    %c0_i32_0 = arith.constant 0 : i32
    return %arg0, %c0_i32 : i32, i32
  }
}

</mosaic_0001>

<bundles_post_ra>
// kernel: tpu_custom_call.1
= control target key start
LH: loop header
LB: loop body
LE: loop exit
PB: predicated region body
PF: predicated region fallthrough
CT: control target
= control target key end

     0   :  { %10 = vsyncpa [#allocation4], 0  ;;  %s1758_s0 = inlined_call_operand.hbm [shape: f32[18,128], index: 0, kind: input, shape index: {}]   ;;  %s1759_s1 = inlined_call_operand.hbm [shape: f32[128,512], index: 1, kind: input, shape index: {}]   ;;  %s1760_s2 = inlined_call_operand.vmem [shape: f32[1,512], index: 2, kind: input, shape index: {}]   ;;  %s1761_s3 = inlined_call_operand.hbm [shape: f32[512,128], index: 3, kind: input, shape index: {}]   ;;  %s1762_s4 = inlined_call_operand.vmem [shape: f32[1,128], index: 4, kind: input, shape index: {}]   ;;  %s1763_s5 = inlined_call_operand.hbm [shape: f32[18,128], index: 5, kind: output, shape index: {}]  }
   0x1   :  { %12 = vsyncpa [#allocation4 + $0x1], 0 }
   0x2   :  { %13 = vsyncpa [#allocation7], 0 }
   0x3   :  { %14 = vsyncpa [#allocation5], 0 }
   0x4   :  { %16 = vsyncpa [#allocation5 + $0x1], 0  ;;  %s1476_s18 = smov 0   ;;  %s1478_s19 = smov 0  }
   0x5   :  { %s1480_s20 = smov 0   ;;  %s1482_s21 = smov 0  }
   0x6 LB: > { %s1497_s22 = sadd.s32 4294967295, %s1431_s21   ;;  %s935_s23 = sadd.s32 4294967294, %s1431_s21   ;;  %s1431_s21 = sphi %s1482_s21, %s1785_s21   ;;  %s1427_s20 = sphi %s1480_s20, %s1784_s20   ;;  %s1423_s19 = sphi %s1478_s19, %s1783_s19   ;;  %s1419_s18 = sphi %s1476_s18, %s1782_s18  }
   0x7   : > { %s1501_s24 = sadd.s32 1, %s1431_s21   ;;  %s29_s25 = sadd.s32 1, %s1427_s20 }
   0x8   : > { %s26_s26 = ssub.s32 %s1431_s21, %s1501_s24  ;;  %p36_p0 = scmp.ne.s32.totalorder %s1427_s20, %s1423_s19 }
   0x9   : > { %p27_p1 = scmp.eq.s32.totalorder %s26_s26, 0  ;;  %p37_p2 = scmp.eq.s32.totalorder %s1431_s21, 0 }
   0xa   : > { %p42_p3 = scmp.ne.s32.totalorder %s1423_s19, %s1419_s18  ;;  %p1764_p4 = scmp.eq.s32.totalorder %s1497_s22, 0 }
   0xb   : > { %s1513_s27 = scalar_select %p27_p1, %s1427_s20, %s29_s25  }
   0xc   : > { %p1515_p5 = por %p37_p2, %p36_p0  ;;  %p1521_p6 = por %p1764_p4, %p42_p3 }
   0xd   : > { %1767 = sst [smem:[#allocation13_spill]] %s1513_s27  ;;  %p150_p7 = scmp.eq.s32.totalorder %s1497_s22, 1 }
   0xe   : > { %s1768_s28 = scalar_select %p1515_p5, 1, 0 }
   0xf   : > { %s1769_s29 = scalar_select %p1521_p6, 1, 0 }
  0x10   : > { %p156_p8 = scmp.eq.s32.totalorder %s935_s23, 1  ;;  %p936_p9 = scmp.ge.s32.totalorder %s1431_s21, 1 }
  0x11   : > { %p163_p10 = scmp.lt.s32.totalorder %s1431_s21, 3  ;;  %p1528_p11 = por %p150_p7, %p36_p0 }
  0x12   : > { %p1532_p12 = por %p156_p8, %p42_p3  ;;  %s1433_s8 = smov [#allocation6]  }
  0x13   : > { %s1770_s30 = scalar_select %p1528_p11, 1, 0 }
  0x14   : > { %s1771_s6 = scalar_select %p1532_p12, 1, 0 }
  0x15   : > { %p1536_p13 = pnand %p936_p9, %p163_p10  ;;  %s175_s9 = sshll.u32 %s1433_s8, 4  ;;  %s176_s9 = int_to_ptr.vmem [resolvable:$true] %s175_s9 }
  0x16   : > { %s1434_s11 = smov [#allocation8]   ;;  %s1277_s15 = scalar_lea.hbm %s1759_s1, 8192 }
  0x17   : > { %s1772_s7 = scalar_select %p1536_p13, 1, 0 }
  0x18   : > { %p1186_p1 = pneg %p1536_p13  ;;  %s191_s12 = sshll.u32 %s1434_s11, 4  ;;  %s1548_s12 = int_to_ptr.vmem [resolvable:$true] %s191_s12 }
  0x19   : > { %p1278_p0 = scmp.ne.s32.totalorder %s1759_s1, %s1277_s15  ;;  %p1284_p9 = scmp.lt.u32.totalorder %s1277_s15, %s1759_s1 }
  0x1a   : > { %p1544_p2 = pnand %p1186_p1, %p1764_p4 }
  0x1c   : > { %p1279_p3 = pneg %p1544_p2 }
  0x1e   : > { %p1280_p7 = pnand %p1279_p3, %p1278_p0 }
  0x20   : > { %p1281_p8 = pneg %p1280_p7 }
  0x22   : > { %p1286_p10 = pnand %p1284_p9, %p1281_p8 }
  0x24   : > { %1289 = shalt.err (!%p1286_p10)
}
  0x25   : > { %s1290_s26 = scalar_lea.vmem %s176_s9, 8192  ;;  %p1298_p11 = scmp.lt.s32.totalorder %s176_s9, %s176_s9 }
  0x26   : > { %p1291_p1 = scmp.ne.s32.totalorder %s176_s9, %s1290_s26  ;;  %p1299_p6 = scmp.lt.s32.totalorder %s1290_s26, %s1290_s26 }
  0x28   : > { %p1293_p4 = pnand %p1291_p1, %p1279_p3  ;;  %p1300_p13 = por %p1299_p6, %p1298_p11 }
  0x2a   : > { %p1294_p12 = pneg %p1293_p4 }
  0x2c   : > { %p1301_p5 = pnand %p1300_p13, %p1294_p12 }
  0x2e   : > { %1304 = shalt.err (!%p1301_p5)
}
  0x2f   : > { %s1435_s8 = smov 512   ;;  %s1436_s11 = smov 32  }
  0x30   : > { %1189 = dma.hbm_to_vmem [thread:$0]  (!%p1544_p2), %s1759_s1, 8192, %s176_s9, [#allocation7], %s1435_s8, %s1435_s8, %s1436_s11  }
  0x31   : > { %s1305_s17 = scalar_lea.hbm %s1761_s3, 8192 }
  0x32   : > { %p1306_p4 = scmp.ne.s32.totalorder %s1761_s3, %s1305_s17  ;;  %p1312_p11 = scmp.lt.u32.totalorder %s1305_s17, %s1761_s3 }
  0x34   : > { %p1308_p5 = pnand %p1306_p4, %p1279_p3 }
  0x36   : > { %p1309_p6 = pneg %p1308_p5 }
  0x38   : > { %p1314_p12 = pnand %p1312_p11, %p1309_p6 }
  0x3a   : > { %1317 = shalt.err (!%p1314_p12)
}
  0x3b   : > { %s1318_s9 = scalar_lea.vmem %s1548_s12, 8192  ;;  %p1326_p8 = scmp.lt.s32.totalorder %s1548_s12, %s1548_s12 }
  0x3c   : > { %p1319_p13 = scmp.ne.s32.totalorder %s1548_s12, %s1318_s9  ;;  %p1327_p9 = scmp.lt.s32.totalorder %s1318_s9, %s1318_s9 }
  0x3e   : > { %p1321_p0 = pnand %p1319_p13, %p1279_p3  ;;  %p1328_p10 = por %p1327_p9, %p1326_p8 }
  0x40   : > { %p1322_p7 = pneg %p1321_p0 }
  0x42   : > { %p1329_p1 = pnand %p1328_p10, %p1322_p7 }
  0x44   : > { %1332 = shalt.err (!%p1329_p1)
}
  0x45   : > { %s1437_s27 = smov 128   ;;  %s1438_s8 = smov 8  }
  0x46   : > { %1192 = dma.hbm_to_vmem [thread:$0]  (!%p1544_p2), %s1761_s3, 8192, %s1548_s12, [#allocation7], %s1437_s27, %s1437_s27, %s1438_s8  }
  0x47   : > { %p939_p4 = scmp.ge.s32.totalorder %s1431_s21, 2 }
  0x48   : > { %p1774_p3 = scmp.ne.s32.totalorder (!%p939_p4), %s1768_s28, 0 }
  0x49   : > { %204 = sbr.rel (%p939_p4) target bundleno = 115 (0x73), region = 32 }
  0x50   : > { %207 = sbr.rel (!%p1774_p3) target bundleno = 115 (0x73), region = 36  ;;  %s208_s14 = sand.u32 (%p1774_p3), 1, %s1427_s20  }
  0x51   : > { %s941_s15 = sshll.u32 (%p1774_p3), %s1431_s21, 1  ;;  %s940_s16 = sshll.u32 (%p1774_p3), %s208_s14, 4 }
  0x52   : > { %s214_s17 = ssub.s32 (%p1774_p3), 3, %s941_s15  ;;  %s1607_s23 = scalar_lea.sflag (%p1774_p3), [#allocation4], %s208_s14 }
  0x53   : > { %p215_p5 = scmp.lt.s32.totalorder (%p1774_p3), %s214_s17, 2  ;;  %s212_s25 = scalar_lea.vmem (%p1774_p3), [#allocation3], %s940_s16 }
  0x57   : > { %s1787_s17 = smov (!%p215_p5, %s214_s17), 2 }
  0x58   : > { %s1604_s10 = sshll.u32 %s1787_s17, 7 }
  0x59   : > { %s219_s12 = ssub.s32 256, %s1604_s10 }
  0x5a   : > { %220 = vsyncadd %s1607_s23, %s219_s12  ;;  %p943_p2 = scmp.ne.s32.totalorder %s1604_s10, 0  ;;  %s970_s28 = sshll.u32 %s1431_s21, 8 }
  0x5b   : > { %s1615_s27 = scalar_lea.hbm %s1758_s0, %s970_s28  ;;  %s225_s8 = sshll.u32 %s212_s25, 4  ;;  %s1617_s8 = int_to_ptr.vmem [resolvable:$true] %s225_s8 }
  0x5c   : > { %s1333_s11 = scalar_lea.hbm %s1615_s27, %s1604_s10  ;;  %s1337_s15 = scalar_lea.hbm %s1758_s0, 384 }
  0x5d   : > { %p1334_p6 = scmp.ne.s32.totalorder %s1615_s27, %s1333_s11  ;;  %p1338_p13 = scmp.lt.u32.totalorder %s1615_s27, %s1758_s0 }
  0x5e   : > { %p1339_p0 = scmp.lt.u32.totalorder %s1337_s15, %s1333_s11  ;;  %p1341_p8 = scmp.lt.u32.totalorder %s1333_s11, %s1615_s27 }
  0x5f   : > { %p1335_p11 = pnand %p1334_p6, %p943_p2 }
  0x60   : > { %p1340_p7 = por %p1339_p0, %p1338_p13 }
  0x61   : > { %p1336_p12 = pneg %p1335_p11 }
  0x62   : > { %p1342_p9 = por %p1341_p8, %p1340_p7 }
  0x64   : > { %p1343_p10 = pnand %p1342_p9, %p1336_p12 }
  0x66   : > { %1346 = shalt.err (!%p1343_p10)
}
  0x67   : > { %s1347_s12 = scalar_lea.vmem %s1617_s8, %s1604_s10  ;;  %s1439_s25 = smov [#allocation3]  }
  0x68   : > { %p1348_p1 = scmp.ne.s32.totalorder %s1617_s8, %s1347_s12  ;;  %s1351_s28 = sshll.u32 %s1439_s25, 4  ;;  %s1352_s28 = int_to_ptr.vmem [resolvable:$false] %s1351_s28 }
  0x69   : > { %s1353_s26 = scalar_lea.vmem %s1352_s28, 512  ;;  %p1354_p6 = scmp.lt.s32.totalorder %s1617_s8, %s1352_s28 }
  0x6a   : > { %p1349_p3 = pnand %p1348_p1, %p943_p2  ;;  %p1355_p11 = scmp.lt.s32.totalorder %s1353_s26, %s1347_s12 }
  0x6c   : > { %p1350_p5 = pneg %p1349_p3  ;;  %p1356_p13 = por %p1355_p11, %p1354_p6 }
  0x6e   : > { %p1357_p0 = pnand %p1356_p13, %p1350_p5 }
  0x70   : > { %1360 = shalt.err (!%p1357_p0)
}
  0x71   : > { %s1440_s9 = smov 128   ;;  %s1441_s11 = smov 8  }
  0x72   : > { %231 = dma.hbm_to_vmem [thread:$0]  (%p943_p2), %s1615_s27, %s1604_s10, %s1617_s8, %s1607_s23, %s1440_s9, %s1440_s9, %s1441_s11  }
  0x73 PF: > { %p1775_p12 = scmp.ne.s32.totalorder %s1772_s7, 0 }
  0x74   : > { %s1647_s13 = sand.u32 (!%p1775_p12), 1, %s1423_s19   ;;  %p1776_p7 = scmp.ne.s32.totalorder (!%p1775_p12), %s1769_s29, 0 }
  0x75   : > { %237 = sbr.rel (%p1775_p12) target bundleno = 692 (0x2b4), region = 40  ;;  %s948_s14 = sshll.u32 (!%p1775_p12), %s1647_s13, 4 }
  0x76   : > { %s240_s15 = scalar_lea.sflag (!%p1775_p12), [#allocation4], %s1647_s13  ;;  %s1653_s16 = scalar_lea.vmem (!%p1775_p12), [#allocation3], %s948_s14 }
  0x7c   : > { %1406 = dma.done.wait (%p1776_p7), %s240_s15, 256  }
  0x7d   : > { %1408 = vsyncadd (%p1776_p7), %s240_s15, 4294967040  ;;  %p1777_p2 = scmp.eq.s32.totalorder %s1497_s22, 0 }
  0x7f   : > { %1410 = dma.done.wait (%p1777_p2), [#allocation7], 16384   ;;  %p1778_p8 = pmov %p1777_p2 }
  0x80   : > { %v1442_v0 = vmov 0.0   ;;  %v291_v1 = vld [vmem:[#allocation6 + $0x8] sm:$0xff]  ;;  %v290_v3 = vld [vmem:[#allocation6] sm:$0xff]  ;;  %v549_v48 = vld [vmem:[#allocation6 + $0x18] sm:$0xff]  ;;  %s277_s17 = scalar_lea.vmem [#allocation9], %s948_s14  ;;  %s824_s12 = scalar_lea.sflag [#allocation5], %s1647_s13 }
  0x81   : > { %1412 = vsyncadd (%p1778_p8), [#allocation7], 4294950912  ;;  %398 = vmatprep.mubr.f32.mxu0 %v1442_v0  ;;  %v293_v2 = vld [vmem:[#allocation6 + $0x28] sm:$0xff]  ;;  %v292_v5 = vld [vmem:[#allocation6 + $0x20] sm:$0xff]  ;;  %p1779_p9 = scmp.ne.s32.totalorder %s1770_s30, 0 }
  0x82   : > { %v1048_v4 = vpack.c.bf16 %v293_v2, %v291_v1  ;;  %v295_v6 = vld [vmem:[#allocation6 + $0x48] sm:$0xff]  ;;  %v1050_v8 = vpack.c.bf16 %v292_v5, %v290_v3  ;;  %v294_v10 = vld [vmem:[#allocation6 + $0x40] sm:$0xff]  ;;  %v551_v49 = vld [vmem:[#allocation6 + $0x38] sm:$0xff]  ;;  %s962_s25 = sshll.u32 (%p1779_p9), %s1497_s22, 1 }
  0x83   : > { %v297_v7 = vld [vmem:[#allocation6 + $0x68] sm:$0xff]  ;;  %v296_v11 = vld [vmem:[#allocation6 + $0x60] sm:$0xff]  ;;  %v1112_v51 = vpack.c.bf16 %v551_v49, %v549_v48  ;;  %v548_v52 = vld [vmem:[#allocation6 + $0x10] sm:$0xff]  ;;  %s832_s28 = ssub.s32 (%p1779_p9), 3, %s962_s25 }
  0x84   : > { %v1052_v9 = vpack.c.bf16 %v297_v7, %v295_v6  ;;  %v299_v12 = vld [vmem:[#allocation6 + $0x88] sm:$0xff]  ;;  %1049 = vmatprep.subr.bf16.mxu0 %v1048_v4  ;;  %v1054_v14 = vpack.c.bf16 %v296_v11, %v294_v10  ;;  %v298_v16 = vld [vmem:[#allocation6 + $0x80] sm:$0xff]  ;;  %v550_v53 = vld [vmem:[#allocation6 + $0x30] sm:$0xff]  ;;  %p833_p10 = scmp.lt.s32.totalorder (%p1779_p9), %s832_s28, 2 }
  0x85   : > { %v301_v13 = vld [vmem:[#allocation6 + $0xa8] sm:$0xff]  ;;  %1051 = vmatpush1.bf16.msra.mxu0 %v1050_v8  ;;  %v300_v17 = vld [vmem:[#allocation6 + $0xa0] sm:$0xff]  ;;  %v553_v54 = vld [vmem:[#allocation6 + $0x58] sm:$0xff]  ;;  %v1114_v57 = vpack.c.bf16 %v550_v53, %v548_v52 }
  0x86   : > { %1053 = vmatprep.subr.bf16.mxu0 %v1052_v9  ;;  %v1056_v15 = vpack.c.bf16 %v301_v13, %v299_v12  ;;  %v303_v18 = vld [vmem:[#allocation6 + $0xc8] sm:$0xff]  ;;  %v1058_v20 = vpack.c.bf16 %v300_v17, %v298_v16  ;;  %v302_v22 = vld [vmem:[#allocation6 + $0xc0] sm:$0xff]  ;;  %v555_v55 = vld [vmem:[#allocation6 + $0x78] sm:$0xff] }
  0x87   : > { %v305_v19 = vld [vmem:[#allocation6 + $0xe8] sm:$0xff]  ;;  %v304_v23 = vld [vmem:[#allocation6 + $0xe0] sm:$0xff]  ;;  %v1116_v58 = vpack.c.bf16 %v555_v55, %v553_v54  ;;  %v552_v59 = vld [vmem:[#allocation6 + $0x50] sm:$0xff] }
  0x88   : > { %v1060_v21 = vpack.c.bf16 %v305_v19, %v303_v18  ;;  %v307_v24 = vld [vmem:[#allocation6 + $0x108] sm:$0xff]  ;;  %v1062_v26 = vpack.c.bf16 %v304_v23, %v302_v22  ;;  %v306_v28 = vld [vmem:[#allocation6 + $0x100] sm:$0xff]  ;;  %v554_v60 = vld [vmem:[#allocation6 + $0x70] sm:$0xff] }
  0x89   : > { %1055 = vmatpush1.bf16.msra.mxu0 %v1054_v14  ;;  %v309_v25 = vld [vmem:[#allocation6 + $0x128] sm:$0xff]  ;;  %v308_v29 = vld [vmem:[#allocation6 + $0x120] sm:$0xff]  ;;  %v557_v61 = vld [vmem:[#allocation6 + $0x98] sm:$0xff]  ;;  %v1118_v1 = vpack.c.bf16 %v554_v60, %v552_v59 }
  0x8a   : > { %1057 = vmatprep.subr.bf16.mxu0 %v1056_v15  ;;  %v1064_v27 = vpack.c.bf16 %v309_v25, %v307_v24  ;;  %v311_v30 = vld [vmem:[#allocation6 + $0x148] sm:$0xff]  ;;  %v1066_v32 = vpack.c.bf16 %v308_v29, %v306_v28  ;;  %v310_v34 = vld [vmem:[#allocation6 + $0x140] sm:$0xff]  ;;  %v559_v62 = vld [vmem:[#allocation6 + $0xb8] sm:$0xff] }
  0x8b   : > { %v313_v31 = vld [vmem:[#allocation6 + $0x168] sm:$0xff]  ;;  %v312_v35 = vld [vmem:[#allocation6 + $0x160] sm:$0xff]  ;;  %v1120_v2 = vpack.c.bf16 %v559_v62, %v557_v61  ;;  %v556_v3 = vld [vmem:[#allocation6 + $0x90] sm:$0xff] }
  0x8c   : > { %v1068_v33 = vpack.c.bf16 %v313_v31, %v311_v30  ;;  %v315_v36 = vld [vmem:[#allocation6 + $0x188] sm:$0xff]  ;;  %v1070_v38 = vpack.c.bf16 %v312_v35, %v310_v34  ;;  %v314_v40 = vld [vmem:[#allocation6 + $0x180] sm:$0xff]  ;;  %v558_v4 = vld [vmem:[#allocation6 + $0xb0] sm:$0xff] }
  0x8d   : > { %1059 = vmatpush1.bf16.msra.mxu0 %v1058_v20  ;;  %v317_v37 = vld [vmem:[#allocation6 + $0x1a8] sm:$0xff]  ;;  %v316_v41 = vld [vmem:[#allocation6 + $0x1a0] sm:$0xff]  ;;  %v561_v5 = vld [vmem:[#allocation6 + $0xd8] sm:$0xff]  ;;  %v1122_v7 = vpack.c.bf16 %v558_v4, %v556_v3 }
  0x8e   : > { %1061 = vmatprep.subr.bf16.mxu0 %v1060_v21  ;;  %v1072_v39 = vpack.c.bf16 %v317_v37, %v315_v36  ;;  %v319_v42 = vld [vmem:[#allocation6 + $0x1c8] sm:$0xff]  ;;  %v1074_v44 = vpack.c.bf16 %v316_v41, %v314_v40  ;;  %v318_v46 = vld [vmem:[#allocation6 + $0x1c0] sm:$0xff]  ;;  %v563_v6 = vld [vmem:[#allocation6 + $0xf8] sm:$0xff] }
  0x8f   : > { %v321_v43 = vld [vmem:[#allocation6 + $0x1e8] sm:$0xff]  ;;  %v320_v47 = vld [vmem:[#allocation6 + $0x1e0] sm:$0xff]  ;;  %v1124_v8 = vpack.c.bf16 %v563_v6, %v561_v5  ;;  %v560_v9 = vld [vmem:[#allocation6 + $0xd0] sm:$0xff] }
  0x90   : > { %v1076_v45 = vpack.c.bf16 %v321_v43, %v319_v42  ;;  %v1078_v50 = vpack.c.bf16 %v320_v47, %v318_v46  ;;  %v288_v56 = vld [vmem:[%s1653_s16] sm:$0xff]  ;;  %v289_v63 = vld [vmem:[%s1653_s16 + $0x8] sm:$0xff] }
  0x91   : > { %1063 = vmatpush1.bf16.msra.mxu0 %v1062_v26  ;;  %v562_v10 = vld [vmem:[#allocation6 + $0xf0] sm:$0xff]  ;;  %v565_v11 = vld [vmem:[#allocation6 + $0x118] sm:$0xff]  ;;  %v455_v36 = vld [vmem:[#allocation8 + $0x80] sm:$0xff] }
  0x92   : > { %1065 = vmatprep.subr.bf16.mxu0 %v1064_v27  ;;  %v567_v12 = vld [vmem:[#allocation6 + $0x138] sm:$0xff]  ;;  %v1126_v13 = vpack.c.bf16 %v562_v10, %v560_v9  ;;  %v564_v15 = vld [vmem:[#allocation6 + $0x110] sm:$0xff]  ;;  %v456_v37 = vld [vmem:[#allocation8 + $0x88] sm:$0xff] }
  0x93   : > { %v1128_v14 = vpack.c.bf16 %v567_v12, %v565_v11  ;;  %v566_v16 = vld [vmem:[#allocation6 + $0x130] sm:$0xff]  ;;  %v569_v17 = vld [vmem:[#allocation6 + $0x158] sm:$0xff]  ;;  %v440_v40 = vld [vmem:[#allocation8 + $0x8] sm:$0xff] }
  0x94   : > { %v571_v18 = vld [vmem:[#allocation6 + $0x178] sm:$0xff]  ;;  %v1130_v19 = vpack.c.bf16 %v566_v16, %v564_v15  ;;  %v568_v21 = vld [vmem:[#allocation6 + $0x150] sm:$0xff]  ;;  %v459_v48 = vld [vmem:[#allocation8 + $0xa0] sm:$0xff] }
  0x95   : > { %1067 = vmatpush1.bf16.msra.mxu0 %v1066_v32  ;;  %v1132_v20 = vpack.c.bf16 %v571_v18, %v569_v17  ;;  %v570_v22 = vld [vmem:[#allocation6 + $0x170] sm:$0xff]  ;;  %v573_v23 = vld [vmem:[#allocation6 + $0x198] sm:$0xff]  ;;  %v460_v49 = vld [vmem:[#allocation8 + $0xa8] sm:$0xff] }
  0x96   : > { %1069 = vmatprep.subr.bf16.mxu0 %v1068_v33  ;;  %v575_v24 = vld [vmem:[#allocation6 + $0x1b8] sm:$0xff]  ;;  %v1134_v25 = vpack.c.bf16 %v570_v22, %v568_v21  ;;  %v572_v27 = vld [vmem:[#allocation6 + $0x190] sm:$0xff]  ;;  %v463_v59 = vld [vmem:[#allocation8 + $0xc0] sm:$0xff] }
  0x97   : > { %v1136_v26 = vpack.c.bf16 %v575_v24, %v573_v23  ;;  %v574_v28 = vld [vmem:[#allocation6 + $0x1b0] sm:$0xff]  ;;  %v577_v29 = vld [vmem:[#allocation6 + $0x1d8] sm:$0xff]  ;;  %v464_v60 = vld [vmem:[#allocation8 + $0xc8] sm:$0xff]  ;;  %v324_v23 = vlaneseq }
  0x98   : > { %v579_v30 = vld [vmem:[#allocation6 + $0x1f8] sm:$0xff]  ;;  %v1138_v31 = vpack.c.bf16 %v574_v28, %v572_v27  ;;  %v576_v33 = vld [vmem:[#allocation6 + $0x1d0] sm:$0xff]  ;;  %v1096_v61 = vpack.c.bf16 %v464_v60, %v463_v59  ;;  %v447_v62 = vld [vmem:[#allocation8 + $0x40] sm:$0xff] }
  0x99   : > { %1071 = vmatpush1.bf16.msra.mxu0 %v1070_v38  ;;  %v1140_v32 = vpack.c.bf16 %v579_v30, %v577_v29  ;;  %v578_v34 = vld [vmem:[#allocation6 + $0x1f0] sm:$0xff]  ;;  %v1080_v38 = vpack.c.bf16 %v456_v37, %v455_v36  ;;  %v458_v43 = vld [vmem:[#allocation8 + $0x98] sm:$0xff]  ;;  %v468_v9 = vld [vmem:[#allocation8 + $0xe8] sm:$0xff]  ;;  %v325_v24 = vshrl.u32 %v324_v23, 7 }
  0x9a   : > { %1073 = vmatprep.subr.bf16.mxu0 %v1072_v39  ;;  %v1142_v35 = vpack.c.bf16 %v578_v34, %v576_v33  ;;  %v439_v39 = vld [vmem:[#allocation8] sm:$0xff]  ;;  %v457_v42 = vld [vmem:[#allocation8 + $0x90] sm:$0xff]  ;;  %v442_v46 = vld [vmem:[#allocation8 + $0x18] sm:$0xff] }
  0x9b   : > { %v1082_v41 = vpack.c.bf16 %v440_v40, %v439_v39  ;;  %1081 = vmatprep.subr.bf16.mxu1 %v1080_v38  ;;  %v461_v53 = vld [vmem:[#allocation8 + $0xb0] sm:$0xff]  ;;  %v462_v54 = vld [vmem:[#allocation8 + $0xb8] sm:$0xff]  ;;  %v451_v11 = vld [vmem:[#allocation8 + $0x60] sm:$0xff]  ;;  %v330_v27 = vsub.s32 1, %v325_v24 }
  0x9c   : > { %v1092_v55 = vpack.c.bf16 %v462_v54, %v461_v53  ;;  %v466_v3 = vld [vmem:[#allocation8 + $0xd8] sm:$0xff]  ;;  %v449_v5 = vld [vmem:[#allocation8 + $0x50] sm:$0xff]  ;;  %v452_v12 = vld [vmem:[#allocation8 + $0x68] sm:$0xff] }
  0x9d   : > { %1075 = vmatpush1.bf16.msra.mxu0 %v1074_v44  ;;  %1083 = vmatpush3.bf16.msra.mxu1 %v1082_v41  ;;  %v1084_v44 = vpack.c.bf16 %v458_v43, %v457_v42  ;;  %v450_v6 = vld [vmem:[#allocation8 + $0x58] sm:$0xff]  ;;  %v453_v17 = vld [vmem:[#allocation8 + $0x70] sm:$0xff]  ;;  %v714_v21 = vld [vmem:[#allocation8 + $0x188] sm:$0xff] }
  0x9e   : > { %1077 = vmatprep.subr.bf16.mxu0 %v1076_v45  ;;  %v441_v45 = vld [vmem:[#allocation8 + $0x10] sm:$0xff]  ;;  %v470_v15 = vld [vmem:[#allocation8 + $0xf8] sm:$0xff] }
  0x9f   : > { %v1086_v47 = vpack.c.bf16 %v442_v46, %v441_v45  ;;  %1085 = vmatprep.subr.bf16.mxu1 %v1084_v44  ;;  %v454_v18 = vld [vmem:[#allocation8 + $0x78] sm:$0xff]  ;;  %v715_v53 = vld [vmem:[#allocation8 + $0x190] sm:$0xff] }
  0xa0   : > { %v716_v54 = vld [vmem:[#allocation8 + $0x198] sm:$0xff] }
  0xa1   : > { %1079 = vmatpush1.bf16.msra.mxu0 %v1078_v50  ;;  %1087 = vmatpush3.bf16.msra.mxu1 %v1086_v47  ;;  %v443_v50 = vld [vmem:[#allocation8 + $0x20] sm:$0xff] }
  0xa2   : > { %1113 = vmatprep.subr.bf16.mxu0 %v1112_v51  ;;  %v444_v51 = vld [vmem:[#allocation8 + $0x28] sm:$0xff] }
  0xa3   : > { %v1090_v52 = vpack.c.bf16 %v444_v51, %v443_v50  ;;  %v697_v50 = vld [vmem:[#allocation8 + $0x100] sm:$0xff]  ;;  %v698_v51 = vld [vmem:[#allocation8 + $0x108] sm:$0xff] }
  0xa4   : > { %399 = vmatmul.mubr.f32.vlgmr.msra.gmra.mrb[0].mxu0 %v288_v56  ;;  %v1146_v59 = vpack.c.bf16 %v698_v51, %v697_v50  ;;  %v710_v50 = vld [vmem:[#allocation8 + $0x168] sm:$0xff] }
  0xa5   : > { %1115 = vmatpush1.bf16.msra.mxu0 %v1114_v57  ;;  %404 = vmatprep.mubr.f32.mxu0 %v1442_v0  ;;  %v446_v57 = vld [vmem:[#allocation8 + $0x38] sm:$0xff] }
  0xa6   : > { %1117 = vmatprep.subr.bf16.mxu0 %v1116_v58 }
  0xa8   : > { %405 = vmatmul.mubr.f32.gmra.mrb[2].mxu0 %v289_v63 }
  0xa9   : > { %1119 = vmatpush1.bf16.msra.mxu0 %v1118_v1  ;;  %656 = vmatprep.mubr.f32.mxu0 %v1442_v0 }
  0xaa   : > { %1121 = vmatprep.subr.bf16.mxu0 %v1120_v2  ;;  %v465_v2 = vld [vmem:[#allocation8 + $0xd0] sm:$0xff] }
  0xab   : > { %v1100_v4 = vpack.c.bf16 %v466_v3, %v465_v2  ;;  %v717_v3 = vld [vmem:[#allocation8 + $0x1a0] sm:$0xff] }
  0xad   : > { %1123 = vmatpush1.bf16.msra.mxu0 %v1122_v7  ;;  %v1102_v7 = vpack.c.bf16 %v450_v6, %v449_v5 }
  0xae   : > { %1125 = vmatprep.subr.bf16.mxu0 %v1124_v8  ;;  %v467_v8 = vld [vmem:[#allocation8 + $0xe0] sm:$0xff] }
  0xaf   : > { %v1104_v10 = vpack.c.bf16 %v468_v9, %v467_v8 }
  0xb1   : > { %1127 = vmatpush1.bf16.msra.mxu0 %v1126_v13  ;;  %v1106_v13 = vpack.c.bf16 %v452_v12, %v451_v11 }
  0xb2   : > { %1129 = vmatprep.subr.bf16.mxu0 %v1128_v14  ;;  %v469_v14 = vld [vmem:[#allocation8 + $0xf0] sm:$0xff] }
  0xb3   : > { %v1108_v16 = vpack.c.bf16 %v470_v15, %v469_v14  ;;  %v701_v14 = vld [vmem:[#allocation8 + $0x120] sm:$0xff]  ;;  %v702_v15 = vld [vmem:[#allocation8 + $0x128] sm:$0xff] }
  0xb4   : > { %v1154_v23 = vpack.c.bf16 %v702_v15, %v701_v14  ;;  %v960_v15 = vld [vmem:[%s1762_s4] ss:$0 sm:$0xff] }
  0xb5   : > { %1131 = vmatpush1.bf16.msra.mxu0 %v1130_v19  ;;  %v1110_v19 = vpack.c.bf16 %v454_v18, %v453_v17  ;;  %v719_v18 = vld [vmem:[#allocation8 + $0x1b0] sm:$0xff] }
  0xb6   : > { %1133 = vmatprep.subr.bf16.mxu0 %v1132_v20  ;;  %v713_v20 = vld [vmem:[#allocation8 + $0x180] sm:$0xff] }
  0xb7   : > { %v1144_v22 = vpack.c.bf16 %v714_v21, %v713_v20 }
  0xb9   : > { %1135 = vmatpush1.bf16.msra.mxu0 %v1134_v25  ;;  %v326_v25 = vsub.s32 0, %v325_v24 }
  0xba   : > { %1137 = vmatprep.subr.bf16.mxu0 %v1136_v26  ;;  %v322_v26 = vld [vmem:[%s1760_s2] sm:$0x3] }
  0xbb   : > { %v327_v28 = vrot.slane %v322_v26, %v326_v25  ;;  %v331_v29 = vrot.slane %v322_v26, %v330_v27  ;;  %v703_v26 = vld [vmem:[#allocation8 + $0x130] sm:$0xff] }
  0xbd   : > { %1139 = vmatpush1.bf16.msra.mxu0 %v1138_v31 }
  0xbe   : > { %1141 = vmatprep.subr.bf16.mxu0 %v1140_v32 }
  0xc1   : > { %1143 = vmatpush1.bf16.msra.mxu0 %v1142_v35 }
  0xc4   : > { %657 = vmatmul.mubr.f32.vlgmr.msra.gmra.mrb[4].mxu0 %v288_v56  ;;  %v445_v56 = vld [vmem:[#allocation8 + $0x30] sm:$0xff] }
  0xc5   : > { %662 = vmatprep.mubr.f32.mxu0 %v1442_v0  ;;  %v1088_v0 = vpack.c.bf16 %v460_v49, %v459_v48  ;;  %v1094_v58 = vpack.c.bf16 %v446_v57, %v445_v56 }
  0xc7   : > { %1089 = vmatprep.subr.bf16.mxu1 %v1088_v0  ;;  %v580_v0 = vld [vmem:[%s1760_s2 + $0x2] sm:$0x3] }
  0xc8   : > { %663 = vmatmul.mubr.f32.gmra.mrb[6].mxu0 %v289_v63  ;;  %1091 = vmatpush3.bf16.msra.mxu1 %v1090_v52  ;;  %v448_v63 = vld [vmem:[#allocation8 + $0x48] sm:$0xff]  ;;  %v585_v56 = vrot.slane %v580_v0, %v326_v25 }
  0xc9   : > { %1093 = vmatprep.subr.bf16.mxu1 %v1092_v55  ;;  %v1098_v1 = vpack.c.bf16 %v448_v63, %v447_v62  ;;  %v699_v62 = vld [vmem:[#allocation8 + $0x110] sm:$0xff]  ;;  %v700_v63 = vld [vmem:[#allocation8 + $0x118] sm:$0xff] }
  0xcc   : > { %1095 = vmatpush3.bf16.msra.mxu1 %v1094_v58  ;;  %v589_v58 = vrot.slane %v580_v0, %v330_v27  ;;  %v704_v27 = vld [vmem:[#allocation8 + $0x138] sm:$0xff]  ;;  %v709_v0 = vld [vmem:[#allocation8 + $0x160] sm:$0xff] }
  0xcd   : > { %1097 = vmatprep.subr.bf16.mxu1 %v1096_v61  ;;  %v1148_v61 = vpack.c.bf16 %v716_v54, %v715_v53  ;;  %v727_v53 = vld [vmem:[#allocation8 + $0x1f0] sm:$0xff]  ;;  %v728_v54 = vld [vmem:[#allocation8 + $0x1f8] sm:$0xff] }
  0xd0   : > { %1099 = vmatpush3.bf16.msra.mxu1 %v1098_v1 }
  0xd1   : > { %1101 = vmatprep.subr.bf16.mxu1 %v1100_v4  ;;  %v718_v4 = vld [vmem:[#allocation8 + $0x1a8] sm:$0xff] }
  0xd4   : > { %1103 = vmatpush3.bf16.msra.mxu1 %v1102_v7 }
  0xd5   : > { %1105 = vmatprep.subr.bf16.mxu1 %v1104_v10  ;;  %v1150_v10 = vpack.c.bf16 %v700_v63, %v699_v62 }
  0xd8   : > { %1107 = vmatpush3.bf16.msra.mxu1 %v1106_v13  ;;  %v1152_v13 = vpack.c.bf16 %v718_v4, %v717_v3 }
  0xd9   : > { %1109 = vmatprep.subr.bf16.mxu1 %v1108_v16 }
  0xdc   : > { %1111 = vmatpush3.bf16.msra.mxu1 %v1110_v19  ;;  %v720_v19 = vld [vmem:[#allocation8 + $0x1b8] sm:$0xff] }
  0xdd   : > { %1145 = vmatprep.subr.bf16.mxu1 %v1144_v22  ;;  %v1156_v25 = vpack.c.bf16 %v720_v19, %v719_v18 }
 0x177   : > { %v400_v30 = vpop.f32.mrb[0].mxu0 }
 0x178   : > { %v401_v31 = vadd.f32 %v400_v30, %v327_v28  ;;  %v402_v32 = vpop.f32.mrb[1].mxu0  ;;  %v722_v30 = vld [vmem:[#allocation8 + $0x1c8] sm:$0xff] }
 0x179   : > { %v403_v33 = vadd.f32 %v402_v32, %v331_v29 }
 0x17a   : > { %v952_v34 = vmul.f32 -1.442695, %v401_v31 }
 0x17b   : > { %v953_v35 = vmul.f32 -1.442695, %v403_v33  ;;  %v406_v36 = vpop.f32.mrb[2].mxu0 }
 0x17c   : > { %1245 = vpow2.f32 %v952_v34  ;;  %v407_v37 = vadd.f32 %v406_v36, %v327_v28  ;;  %v408_v38 = vpop.f32.mrb[3].mxu0  ;;  %v706_v34 = vld [vmem:[#allocation8 + $0x148] sm:$0xff]  ;;  %v724_v36 = vld [vmem:[#allocation8 + $0x1d8] sm:$0xff] }
 0x17d   : > { %1247 = vpow2.f32 %v953_v35  ;;  %v409_v39 = vadd.f32 %v408_v38, %v331_v29  ;;  %v721_v29 = vld [vmem:[#allocation8 + $0x1c0] sm:$0xff]  ;;  %v723_v35 = vld [vmem:[#allocation8 + $0x1d0] sm:$0xff] }
 0x17e   : > { %v954_v40 = vmul.f32 -1.442695, %v407_v37  ;;  %v1160_v32 = vpack.c.bf16 %v722_v30, %v721_v29 }
 0x17f   : > { %v955_v41 = vmul.f32 -1.442695, %v409_v39 }
 0x180   : > { %1249 = vpow2.f32 %v954_v40  ;;  %v707_v40 = vld [vmem:[#allocation8 + $0x150] sm:$0xff] }
 0x181   : > { %1251 = vpow2.f32 %v955_v41  ;;  %v708_v41 = vld [vmem:[#allocation8 + $0x158] sm:$0xff] }
 0x186   : > { %v1246_v42 = vpop.eup %1245 }
 0x187   : > { %v1248_v43 = vpop.eup %1247  ;;  %v423_v44 = vadd.f32 1.0, %v1246_v42 }
 0x188   : > { %v424_v45 = vadd.f32 1.0, %v1248_v43 }
 0x189   : > { %1253 = vrcp.f32 %v423_v44  ;;  %v725_v44 = vld [vmem:[#allocation8 + $0x1e0] sm:$0xff] }
 0x18a   : > { %v1250_v46 = vpop.eup %1249  ;;  %1255 = vrcp.f32 %v424_v45  ;;  %v726_v45 = vld [vmem:[#allocation8 + $0x1e8] sm:$0xff] }
 0x18b   : > { %v1252_v47 = vpop.eup %1251  ;;  %v425_v48 = vadd.f32 1.0, %v1250_v46 }
 0x18c   : > { %v426_v49 = vadd.f32 1.0, %v1252_v47  ;;  %v1166_v47 = vpack.c.bf16 %v708_v41, %v707_v40 }
 0x18d   : > { %1257 = vrcp.f32 %v425_v48 }
 0x18e   : > { %1259 = vrcp.f32 %v426_v49  ;;  %v1168_v49 = vpack.c.bf16 %v726_v45, %v725_v44 }
 0x193   : > { %v1254_v52 = vpop.eup %1253 }
 0x194   : > { %v1256_v55 = vpop.eup %1255  ;;  %v435_v60 = vmul.f32 %v1254_v52, %v401_v31  ;;  %v1158_v31 = vpack.c.bf16 %v704_v27, %v703_v26 }
 0x195   : > { %v436_v57 = vmul.f32 %v1256_v55, %v403_v33  ;;  %v705_v33 = vld [vmem:[#allocation8 + $0x140] sm:$0xff] }
 0x197   : > { %v1258_v1 = vpop.eup %1257  ;;  %535 = vmatprep.mubr.f32.mxu1 %v436_v57  ;;  %v658_v2 = vpop.f32.mrb[4].mxu0  ;;  %v1172_v57 = vpack.c.bf16 %v728_v54, %v727_v53 }
 0x198   : > { %v1260_v5 = vpop.eup %1259  ;;  %v1675_v6 = vadd.f32 %v658_v2, %v585_v56  ;;  %536 = vmatmul.mubr.f32.vlgmr.msra.gmra.mrb[0].mxu1 %v435_v60  ;;  %v660_v7 = vpop.f32.mrb[5].mxu0  ;;  %v437_v11 = vmul.f32 %v1258_v1, %v407_v37  ;;  %v1162_v37 = vpack.c.bf16 %v706_v34, %v705_v33 }
 0x199   : > { %v438_v8 = vmul.f32 %v1260_v5, %v409_v39  ;;  %v1677_v9 = vadd.f32 %v660_v7, %v589_v58  ;;  %1147 = vmatpush3.bf16.msra.mxu1 %v1146_v59  ;;  %v1164_v39 = vpack.c.bf16 %v724_v36, %v723_v35  ;;  %v712_v59 = vld [vmem:[#allocation8 + $0x178] sm:$0xff] }
 0x19a   : > { %v956_v12 = vmul.f32 -1.442695, %v1675_v6  ;;  %1149 = vmatprep.subr.bf16.mxu1 %v1148_v61 }
 0x19b   : > { %v957_v16 = vmul.f32 -1.442695, %v1677_v9  ;;  %540 = vmatprep.mubr.f32.mxu1 %v438_v8  ;;  %v664_v17 = vpop.f32.mrb[6].mxu0 }
 0x19c   : > { %1261 = vpow2.f32 %v956_v12  ;;  %v1681_v20 = vadd.f32 %v664_v17, %v585_v56  ;;  %541 = vmatmul.mubr.f32.gmra.mrb[2].mxu1 %v437_v11  ;;  %v666_v21 = vpop.f32.mrb[7].mxu0  ;;  %v1170_v56 = vpack.c.bf16 %v710_v50, %v709_v0 }
 0x19d   : > { %1263 = vpow2.f32 %v957_v16  ;;  %v1683_v22 = vadd.f32 %v666_v21, %v589_v58  ;;  %1151 = vmatpush3.bf16.msra.mxu1 %v1150_v10  ;;  %v711_v58 = vld [vmem:[#allocation8 + $0x170] sm:$0xff] }
 0x19e   : > { %v958_v24 = vmul.f32 -1.442695, %v1681_v20  ;;  %1153 = vmatprep.subr.bf16.mxu1 %v1152_v13  ;;  %v1174_v60 = vpack.c.bf16 %v712_v59, %v711_v58 }
 0x19f   : > { %v959_v28 = vmul.f32 -1.442695, %v1683_v22 }
 0x1a0   : > { %1265 = vpow2.f32 %v958_v24 }
 0x1a1   : > { %1267 = vpow2.f32 %v959_v28  ;;  %1155 = vmatpush3.bf16.msra.mxu1 %v1154_v23 }
 0x1a2   : > { %1157 = vmatprep.subr.bf16.mxu1 %v1156_v25 }
 0x1a5   : > { %1159 = vmatpush3.bf16.msra.mxu1 %v1158_v31 }
 0x1a6   : > { %v1262_v38 = vpop.eup %1261  ;;  %1161 = vmatprep.subr.bf16.mxu1 %v1160_v32 }
 0x1a7   : > { %v1264_v42 = vpop.eup %1263  ;;  %v681_v43 = vadd.f32 1.0, %v1262_v38 }
 0x1a8   : > { %v682_v46 = vadd.f32 1.0, %v1264_v42 }
 0x1a9   : > { %1269 = vrcp.f32 %v681_v43  ;;  %1163 = vmatpush3.bf16.msra.mxu1 %v1162_v37 }
 0x1aa   : > { %v1266_v48 = vpop.eup %1265  ;;  %1271 = vrcp.f32 %v682_v46  ;;  %1165 = vmatprep.subr.bf16.mxu1 %v1164_v39 }
 0x1ab   : > { %v1268_v51 = vpop.eup %1267  ;;  %v683_v52 = vadd.f32 1.0, %v1266_v48 }
 0x1ac   : > { %v684_v55 = vadd.f32 1.0, %v1268_v51 }
 0x1ad   : > { %1273 = vrcp.f32 %v683_v52  ;;  %1167 = vmatpush3.bf16.msra.mxu1 %v1166_v47 }
 0x1ae   : > { %1275 = vrcp.f32 %v684_v55  ;;  %1169 = vmatprep.subr.bf16.mxu1 %v1168_v49 }
 0x1b1   : > { %1171 = vmatpush3.bf16.msra.mxu1 %v1170_v56 }
 0x1b2   : > { %1173 = vmatprep.subr.bf16.mxu1 %v1172_v57 }
 0x1b3   : > { %v1270_v61 = vpop.eup %1269 }
 0x1b4   : > { %v1272_v62 = vpop.eup %1271  ;;  %v693_v1 = vmul.f32 %v1270_v61, %v1675_v6 }
 0x1b5   : > { %v694_v63 = vmul.f32 %v1272_v62, %v1677_v9  ;;  %1175 = vmatpush3.bf16.msra.mxu1 %v1174_v60 }
 0x1b7   : > { %v1274_v2 = vpop.eup %1273  ;;  %793 = vmatprep.mubr.f32.mxu1 %v694_v63 }
 0x1b8   : > { %v1276_v3 = vpop.eup %1275  ;;  %794 = vmatmul.mubr.f32.vlgmr.msra.gmra.mrb[4].mxu1 %v693_v1  ;;  %v695_v5 = vmul.f32 %v1274_v2, %v1681_v20 }
 0x1b9   : > { %v696_v4 = vmul.f32 %v1276_v3, %v1683_v22 }
 0x1bb   : > { %798 = vmatprep.mubr.f32.mxu1 %v696_v4 }
 0x1bc   : > { %799 = vmatmul.mubr.f32.gmra.mrb[6].mxu1 %v695_v5 }
 0x26b   : > { %v1004_v7 = vpop.f32.mrb[0].mxu1 }
 0x26c   : > { %v1005_v8 = vpop.f32.mrb[1].mxu1 }
 0x26d   : > { %v1006_v10 = vadd.f32 %v1005_v8, %v1004_v7 }
 0x26f   : > { %v1007_v11 = vpop.f32.mrb[2].mxu1 }
 0x270   : > { %v1008_v12 = vpop.f32.mrb[3].mxu1 }
 0x271   : > { %v1009_v9 = vadd.f32 %v1008_v12, %v1007_v11 }
 0x28b   : > { %v1042_v13 = vpop.f32.mrb[4].mxu1 }
 0x28c   : > { %v1043_v6 = vpop.f32.mrb[5].mxu1 }
 0x28d   : > { %v1044_v14 = vadd.f32 %v1043_v6, %v1042_v13 }
 0x28f   : > { %v806_v16 = vadd.f32 %v1044_v14, %v1006_v10  ;;  %v1045_v17 = vpop.f32.mrb[6].mxu1 }
 0x290   : > { %v1046_v18 = vpop.f32.mrb[7].mxu1 }
 0x291   : > { %v819_v19 = vadd.f32 %v960_v15, %v806_v16  ;;  %v1047_v20 = vadd.f32 %v1046_v18, %v1045_v17  ;;  %830 = sbr.rel (!%p1779_p9) target bundleno = 692 (0x2b4), region = 56 }
 0x293   : > { %821 = vst [vmem:[%s277_s17] sm:$0xff] %v819_v19  ;;  %v807_v21 = vadd.f32 %v1047_v20, %v1009_v9 }
 0x295   : > { %v820_v22 = vadd.f32 %v960_v15, %v807_v21 }
 0x297   : > { %822 = vst [vmem:[%s277_s17 + $0x8] sm:$0xff] %v820_v22 }
 0x298   : > { %s1789_s28 = smov (!%p833_p10, %s832_s28), 2 }
 0x299   : > { %s1700_s26 = sshll.u32 %s1789_s28, 7 }
 0x29a   : > { %s837_s9 = ssub.s32 256, %s1700_s26 }
 0x29b   : > { %838 = vsyncadd %s824_s12, %s837_s9  ;;  %p964_p1 = scmp.ne.s32.totalorder %s1700_s26, 0  ;;  %s971_s11 = sshll.u32 %s1497_s22, 8 }
 0x29c   : > { %s1710_s15 = scalar_lea.hbm %s1763_s5, %s971_s11  ;;  %s843_s16 = sshll.u32 %s277_s17, 4  ;;  %s1712_s16 = int_to_ptr.vmem [resolvable:$true] %s843_s16 }
 0x29d   : > { %s1361_s29 = scalar_lea.vmem %s1712_s16, %s1700_s26  ;;  %s1443_s7 = smov [#allocation9]  }
 0x29e   : > { %p1362_p3 = scmp.ne.s32.totalorder %s1712_s16, %s1361_s29  ;;  %s1365_s10 = sshll.u32 %s1443_s7, 4  ;;  %s1366_s10 = int_to_ptr.vmem [resolvable:$false] %s1365_s10 }
 0x29f   : > { %s1367_s22 = scalar_lea.vmem %s1366_s10, 512  ;;  %p1368_p11 = scmp.lt.s32.totalorder %s1712_s16, %s1366_s10 }
 0x2a0   : > { %p1363_p5 = pnand %p1362_p3, %p964_p1  ;;  %p1369_p13 = scmp.lt.s32.totalorder %s1367_s22, %s1361_s29 }
 0x2a2   : > { %p1364_p6 = pneg %p1363_p5  ;;  %p1370_p0 = por %p1369_p13, %p1368_p11 }
 0x2a4   : > { %p1371_p12 = pnand %p1370_p0, %p1364_p6 }
 0x2a6   : > { %1374 = shalt.err (!%p1371_p12)
}
 0x2a7   : > { %s1375_s23 = scalar_lea.hbm %s1710_s15, %s1700_s26  ;;  %s1379_s17 = scalar_lea.hbm %s1763_s5, 384 }
 0x2a8   : > { %p1376_p7 = scmp.ne.s32.totalorder %s1710_s15, %s1375_s23  ;;  %p1380_p9 = scmp.lt.u32.totalorder %s1710_s15, %s1763_s5 }
 0x2a9   : > { %p1381_p10 = scmp.lt.u32.totalorder %s1379_s17, %s1375_s23  ;;  %p1383_p5 = scmp.lt.u32.totalorder %s1375_s23, %s1710_s15 }
 0x2aa   : > { %p1377_p2 = pnand %p1376_p7, %p964_p1 }
 0x2ab   : > { %p1382_p3 = por %p1381_p10, %p1380_p9 }
 0x2ac   : > { %p1378_p8 = pneg %p1377_p2 }
 0x2ad   : > { %p1384_p6 = por %p1383_p5, %p1382_p3 }
 0x2af   : > { %p1385_p11 = pnand %p1384_p6, %p1378_p8 }
 0x2b1   : > { %1388 = shalt.err (!%p1385_p11)
}
 0x2b2   : > { %s1444_s9 = smov 128   ;;  %s1445_s11 = smov 8  }
 0x2b3   : > { %849 = dma.vmem_to_hbm [thread:$0]  (%p964_p1), %s1712_s16, %s1700_s26, %s1710_s15, %s824_s12, %s1444_s9, %s1444_s9, %s1445_s11  }
 0x2b4 PF: > { %s858_s30 = sand.u32 1, %s1419_s18   ;;  %p1780_p13 = scmp.ne.s32.totalorder %s1771_s6, 0 }
 0x2b5   : > { %s859_s14 = scalar_lea.sflag [#allocation5], %s858_s30 }
 0x2b6   : > { %p1194_p0 = pnand %p939_p4, %p1780_p13 }
 0x2b8   : > { %1414 = dma.done.wait (!%p1194_p0), %s859_s14, 256  }
 0x2b9   : > { %1416 = vsyncadd (!%p1194_p0), %s859_s14, 4294967040  ;;  %s1781_s29 = sld [smem:[#allocation13_spill]]  ;;  %p19_p12 = scmp.ge.s32.totalorder %s1501_s24, 4  }
 0x2ba   : > { %s1782_s18 = smov %s1423_s19  ;;  %s1783_s19 = smov %s1427_s20 }
 0x2bb   : > { %s1785_s21 = smov %s1501_s24  ;;  %21 = sbr.rel (!%p19_p12) target bundleno = 6 (0x6), region = 93 }
 0x2bf   : > { %s1784_s20 = smov %s1781_s29 }
 0x2c2   :  { %864 = vsyncpa [#allocation4], 1 }
 0x2c3   :  { %866 = vsyncpa [#allocation4 + $0x1], 1 }
 0x2c4   :  { %867 = vsyncpa [#allocation7], 1 }
 0x2c5   :  { %868 = vsyncpa [#allocation5], 1 }
 0x2c6   :  { %870 = vsyncpa [#allocation5 + $0x1], 1 }

</bundles_post_ra>
